<compile_context>
chip_gen: v6e
topology: v6e:2x2x1
jax: 0.10.0
libtpu: 0.0.40
codegen_flags: <defaults>
</compile_context>

<pallas_src>
import numpy as np
import jax
import jax.numpy as jnp
from jax.experimental import pallas as pl
from jax.experimental.pallas import tpu as pltpu


def _round_up(x, m):
    return (x + m - 1) // m * m


# --------------------------------------------------------------------------- #
# Kernel
# --------------------------------------------------------------------------- #
def pffn_kernel(x_ref, w1t_ref, b1_ref, w2t_ref, b2_ref, o_ref):
    # x_ref:   (tm, C)  row block of the flattened (M, C) input (I/O dtype)
    # w1t_ref: (C, C)   conv1.weight^T, pre-cast to the MXU compute dtype
    # b1_ref:  (1, C)   f32
    # w2t_ref: (C, C)   conv2.weight^T, pre-cast to the MXU compute dtype
    # b2_ref:  (1, C)   f32
    # TODO(synk): dropout layers are identity here (eval-mode semantics);
    # training-mode dropout would need pltpu.prng_seed + stateful_bernoulli.
    x = x_ref[...]
    h = jnp.dot(x.astype(w1t_ref.dtype), w1t_ref[...],
                preferred_element_type=jnp.float32)       # MXU, f32 accumulate
    h = jnp.maximum(h + b1_ref[...], 0.0)                 # bias + ReLU in f32 (VPU)
    y = jnp.dot(h.astype(w2t_ref.dtype), w2t_ref[...],
                preferred_element_type=jnp.float32)
    y = y + b2_ref[...] + x.astype(jnp.float32)           # bias + residual in f32
    o_ref[...] = y.astype(o_ref.dtype)


# --------------------------------------------------------------------------- #
# Wrapper helpers
# --------------------------------------------------------------------------- #
def prepare_pffn_params(w1, b1, w2, b2, *, compute_dtype=jnp.bfloat16):
    """Format Conv1d(kernel_size=1) weights ONCE (hoisted out of the per-call path).

    w1, w2: (C, C) = (out_channels, in_channels) with the kernel dim squeezed.
    b1, b2: (C,).
    """
    C = w1.shape[0]
    w1t = jnp.transpose(w1).astype(compute_dtype)   # so the kernel does x @ W1^T
    w2t = jnp.transpose(w2).astype(compute_dtype)
    b1r = b1.reshape(1, C).astype(jnp.float32)
    b2r = b2.reshape(1, C).astype(jnp.float32)
    return (w1t, b1r, w2t, b2r)


def _resident_spec_kwargs():
    """Feature probe for single-buffered resident weights (pipeline_mode=Buffered(1)).

    Catches only construction-time TypeError/AttributeError; real lowering or
    VMEM errors from pallas_call are NOT masked and never trigger a fallback
    that would use more VMEM.
    """
    try:
        mode = pl.Buffered(1)
        pl.BlockSpec((8, 128), lambda i: (0, 0), pipeline_mode=mode)
        return {"pipeline_mode": mode}, 1
    except (AttributeError, TypeError):
        return {}, 2   # default double-buffered resident weights (more VMEM)


def _vmem_capacity_bytes():
    try:
        cap = int(pltpu.get_tpu_info().vmem_capacity_bytes)
        if cap > 0:
            return cap
    except Exception:
        pass
    return 64 << 20    # conservative fallback (v7x per-TensorCore VMEM)


def _vmem_estimate(tm, C, io_bytes, w_bytes, weight_buffers):
    weights = weight_buffers * 2 * C * C * w_bytes        # two resident weight mats
    biases = weight_buffers * 2 * C * 4                   # two f32 bias rows
    x_tiles = 2 * tm * C * io_bytes                       # x tile, double-buffered
    o_tiles = 2 * tm * C * io_bytes                       # out tile, double-buffered
    interm = tm * C * (8 + 2 * w_bytes)                   # h/y f32 + compute-dtype casts
    return weights + biases + x_tiles + o_tiles + interm


def pffn_apply(x, params, *, tm=512):
    """Fused PFFN forward with pre-formatted params.

    x: (B, L, C) activations; the output dtype matches x.dtype (pass bf16
       activations for the memory-bound fast path).
    params: output of prepare_pffn_params().
    tm: max row tile (sweep 256/512/1024; larger amortizes per-step overhead).
    """
    w1t, b1r, w2t, b2r = params
    B, L, C = x.shape
    M = B * L
    x2d = x.reshape(M, C)                         # no-copy reshape; no padding

    io_bytes = np.dtype(x.dtype).itemsize
    w_bytes = np.dtype(w1t.dtype).itemsize

    resident_kwargs, weight_buffers = _resident_spec_kwargs()

    capacity = _vmem_capacity_bytes()
    budget = capacity - (6 << 20)                 # headroom for Mosaic scratch

    # Keep >= 2 row tiles so the "parallel" axis shards across both TensorCores
    # on v7x; tm stays a multiple of 8 for the (8, 128) block constraint.
    tm_eff = min(int(tm), _round_up(pl.cdiv(M, 2), 8))
    tm_eff = max(_round_up(tm_eff, 8), 8)
    while tm_eff > 8 and _vmem_estimate(tm_eff, C, io_bytes, w_bytes,
                                        weight_buffers) > budget:
        tm_eff = max(_round_up(tm_eff // 2, 8), 8)

    grid_m = pl.cdiv(M, tm_eff)                   # ragged last block: masked store

    estimate = _vmem_estimate(tm_eff, C, io_bytes, w_bytes, weight_buffers)
    vmem_limit = min(max(int(estimate * 1.25) + (4 << 20), 16 << 20),
                     capacity - (2 << 20))

    cost = pl.CostEstimate(
        flops=4 * M * C * C,                      # two MxCxC matmuls
        transcendentals=0,
        bytes_accessed=2 * M * C * io_bytes + 2 * C * C * w_bytes + 2 * C * 4,
    )

    in_specs = [
        pl.BlockSpec((tm_eff, C), lambda i: (i, 0)),                  # x row tile
        pl.BlockSpec((C, C), lambda i: (0, 0), **resident_kwargs),    # W1^T (resident)
        pl.BlockSpec((1, C), lambda i: (0, 0), **resident_kwargs),    # b1
        pl.BlockSpec((C, C), lambda i: (0, 0), **resident_kwargs),    # W2^T (resident)
        pl.BlockSpec((1, C), lambda i: (0, 0), **resident_kwargs),    # b2
    ]

    out2d = pl.pallas_call(
        pffn_kernel,
        out_shape=jax.ShapeDtypeStruct((M, C), x.dtype),
        grid_spec=pltpu.PrefetchScalarGridSpec(
            num_scalar_prefetch=0,
            grid=(grid_m,),
            in_specs=in_specs,
            out_specs=pl.BlockSpec((tm_eff, C), lambda i: (i, 0)),
        ),
        compiler_params=pltpu.CompilerParams(
            dimension_semantics=("parallel",),    # row tiles shard across TCs
            vmem_limit_bytes=vmem_limit,
        ),
        cost_estimate=cost,
    )(x2d, w1t, b1r, w2t, b2r)

    return out2d.reshape(B, L, C)


def pffn_forward(x, w1, b1, w2, b2, *, tm=512, compute_dtype=jnp.bfloat16):
    """Convenience wrapper: prepare params then apply (prefer caching params)."""
    params = prepare_pffn_params(w1, b1, w2, b2, compute_dtype=compute_dtype)
    return pffn_apply(x, params, tm=tm)


def pffn_reference(x, w1, b1, w2, b2):
    h = jnp.maximum(jnp.einsum("blc,oc->blo", x, w1) + b1, 0.0)
    y = jnp.einsum("blc,oc->blo", h, w2) + b2
    return y + x


# --------------------------------------------------------------------------- #
# Demo / self-test
# --------------------------------------------------------------------------- #
if __name__ == "__main__":
    B, L, C = 2, 16, 32          # batch=2, seq=16, hid_size=32
    key = jax.random.PRNGKey(0)
    kx, k1, kb1, k2, kb2 = jax.random.split(key, 5)

    # Deterministic init (uniform like PyTorch conv defaults, scaled by 1/sqrt(C)).
    bound = 1.0 / float(np.sqrt(C))
    x = jax.random.normal(kx, (B, L, C), dtype=jnp.float32)
    w1 = jax.random.uniform(k1, (C, C), minval=-bound, maxval=bound, dtype=jnp.float32)
    b1 = jax.random.uniform(kb1, (C,), minval=-bound, maxval=bound, dtype=jnp.float32)
    w2 = jax.random.uniform(k2, (C, C), minval=-bound, maxval=bound, dtype=jnp.float32)
    b2 = jax.random.uniform(kb2, (C,), minval=-bound, maxval=bound, dtype=jnp.float32)

    ref = pffn_reference(x, w1, b1, w2, b2)

    # Exactness check: f32 I/O + f32 MXU operands (same math as the PyTorch module).
    params_f32 = prepare_pffn_params(w1, b1, w2, b2, compute_dtype=jnp.float32)
    out_f32 = pffn_apply(x, params_f32)
    jax.block_until_ready(out_f32)
    assert out_f32.shape == (B, L, C)
    assert jnp.allclose(out_f32, ref, atol=1e-4, rtol=1e-4), "f32 path mismatch"

    # Performance path: bf16 activation I/O + bf16 MXU operands, f32 accumulate.
    params_bf16 = prepare_pffn_params(w1, b1, w2, b2)     # hoisted weight prep (once)
    out_bf16 = pffn_apply(x.astype(jnp.bfloat16), params_bf16)
    jax.block_until_ready(out_bf16)
    assert out_bf16.shape == (B, L, C)
    assert out_bf16.dtype == jnp.bfloat16
    assert jnp.allclose(out_bf16.astype(jnp.float32), ref,
                        atol=5e-2, rtol=5e-2), "bf16 path mismatch"

    print("KERNEL_OK")
</pallas_src>

<mosaic_0001>
module attributes {stable_mosaic.version = 11 : i64} {
  func.func @pffn_kernel(%arg0: i32, %arg1: memref<16x32xf32, #tpu.memory_space<vmem>>, %arg2: memref<32x32xf32, #tpu.memory_space<vmem>>, %arg3: memref<1x32xf32, #tpu.memory_space<vmem>>, %arg4: memref<32x32xf32, #tpu.memory_space<vmem>>, %arg5: memref<1x32xf32, #tpu.memory_space<vmem>>, %arg6: memref<16x32xf32, #tpu.memory_space<vmem>>) attributes {dimension_semantics = [#tpu.dimension_semantics<parallel>], iteration_bounds = array<i64: 2>, scalar_prefetch = 0 : i64, scratch_operands = 0 : i64, tpu.core_type = #tpu.core_type<tc>, window_params = [{transform_indices = @transform_0, window_bounds = array<i64: 16, 32>}, {pipeline_mode = #tpu.pipeline_mode<synchronous>, transform_indices = @transform_1, window_bounds = array<i64: 32, 32>}, {pipeline_mode = #tpu.pipeline_mode<synchronous>, transform_indices = @transform_2, window_bounds = array<i64: 1, 32>}, {pipeline_mode = #tpu.pipeline_mode<synchronous>, transform_indices = @transform_3, window_bounds = array<i64: 32, 32>}, {pipeline_mode = #tpu.pipeline_mode<synchronous>, transform_indices = @transform_4, window_bounds = array<i64: 1, 32>}, {transform_indices = @transform_5, window_bounds = array<i64: 16, 32>}]} {
    %c0 = arith.constant 0 : index
    %c0_0 = arith.constant 0 : index
    %0 = vector.load %arg1[%c0, %c0_0] : memref<16x32xf32, #tpu.memory_space<vmem>>, vector<16x32xf32>
    %c0_1 = arith.constant 0 : index
    %c0_2 = arith.constant 0 : index
    %1 = vector.load %arg2[%c0_1, %c0_2] : memref<32x32xf32, #tpu.memory_space<vmem>>, vector<32x32xf32>
    %cst = arith.constant dense<0.000000e+00> : vector<16x32xf32>
    %2 = tpu.matmul %0, %1, %cst {dimension_numbers = #tpu.dot_dimension_numbers<[1], [0], [0], [1], [0, 0, 1, 1], [], []>} : vector<16x32xf32>, vector<32x32xf32>, vector<16x32xf32> -> vector<16x32xf32>
    %c0_3 = arith.constant 0 : index
    %c0_4 = arith.constant 0 : index
    %3 = vector.load %arg3[%c0_3, %c0_4] : memref<1x32xf32, #tpu.memory_space<vmem>>, vector<1x32xf32>
    %4 = vector.broadcast %3 : vector<1x32xf32> to vector<16x32xf32>
    %5 = arith.addf %2, %4 : vector<16x32xf32>
    %cst_5 = arith.constant 0.000000e+00 : f32
    %6 = vector.broadcast %cst_5 : f32 to vector<16x32xf32>
    %7 = arith.maximumf %5, %6 : vector<16x32xf32>
    %c0_6 = arith.constant 0 : index
    %c0_7 = arith.constant 0 : index
    %8 = vector.load %arg4[%c0_6, %c0_7] : memref<32x32xf32, #tpu.memory_space<vmem>>, vector<32x32xf32>
    %cst_8 = arith.constant dense<0.000000e+00> : vector<16x32xf32>
    %9 = tpu.matmul %7, %8, %cst_8 {dimension_numbers = #tpu.dot_dimension_numbers<[1], [0], [0], [1], [0, 0, 1, 1], [], []>} : vector<16x32xf32>, vector<32x32xf32>, vector<16x32xf32> -> vector<16x32xf32>
    %c0_9 = arith.constant 0 : index
    %c0_10 = arith.constant 0 : index
    %10 = vector.load %arg5[%c0_9, %c0_10] : memref<1x32xf32, #tpu.memory_space<vmem>>, vector<1x32xf32>
    %11 = vector.broadcast %10 : vector<1x32xf32> to vector<16x32xf32>
    %12 = arith.addf %9, %11 : vector<16x32xf32>
    %13 = arith.addf %12, %0 : vector<16x32xf32>
    %c0_11 = arith.constant 0 : index
    %c0_12 = arith.constant 0 : index
    %14 = vector.load %arg6[%c0_11, %c0_12] : memref<16x32xf32, #tpu.memory_space<vmem>>, vector<16x32xf32>
    tpu.vector_store %arg6[%c0_11, %c0_12], %13 {strides = array<i32>} : memref<16x32xf32, #tpu.memory_space<vmem>>, vector<16x32xf32>,
    return
  }
  func.func @transform_0(%arg0: i32) -> (i32, i32) {
    %c0_i32 = arith.constant 0 : i32
    %c0_i32_0 = arith.constant 0 : i32
    return %arg0, %c0_i32 : i32, i32
  }
  func.func @transform_1(%arg0: i32) -> (i32, i32) {
    %c0_i32 = arith.constant 0 : i32
    %c0_i32_0 = arith.constant 0 : i32
    %c0_i32_1 = arith.constant 0 : i32
    return %c0_i32, %c0_i32_0 : i32, i32
  }
  func.func @transform_2(%arg0: i32) -> (i32, i32) {
    %c0_i32 = arith.constant 0 : i32
    %c0_i32_0 = arith.constant 0 : i32
    %c0_i32_1 = arith.constant 0 : i32
    return %c0_i32, %c0_i32_0 : i32, i32
  }
  func.func @transform_3(%arg0: i32) -> (i32, i32) {
    %c0_i32 = arith.constant 0 : i32
    %c0_i32_0 = arith.constant 0 : i32
    %c0_i32_1 = arith.constant 0 : i32
    return %c0_i32, %c0_i32_0 : i32, i32
  }
  func.func @transform_4(%arg0: i32) -> (i32, i32) {
    %c0_i32 = arith.constant 0 : i32
    %c0_i32_0 = arith.constant 0 : i32
    %c0_i32_1 = arith.constant 0 : i32
    return %c0_i32, %c0_i32_0 : i32, i32
  }
  func.func @transform_5(%arg0: i32) -> (i32, i32) {
    %c0_i32 = arith.constant 0 : i32
    %c0_i32_0 = arith.constant 0 : i32
    return %arg0, %c0_i32 : i32, i32
  }
}

</mosaic_0001>

<bundles_post_ra>
// kernel: tpu_custom_call.1
= control target key start
LH: loop header
LB: loop body
LE: loop exit
PB: predicated region body
PF: predicated region fallthrough
CT: control target
= control target key end

     0   :  { %10 = vsyncpa [#allocation3], 0  ;;  %s1105_s0 = inlined_call_operand.hbm [shape: f32[32,32], index: 0, kind: input, shape index: {}]   ;;  %s1106_s1 = inlined_call_operand.hbm [shape: f32[32,32], index: 1, kind: input, shape index: {}]   ;;  %s1107_s2 = inlined_call_operand.vmem [shape: f32[1,32], index: 2, kind: input, shape index: {}]   ;;  %s1108_s3 = inlined_call_operand.hbm [shape: f32[32,32], index: 3, kind: input, shape index: {}]   ;;  %s1109_s4 = inlined_call_operand.vmem [shape: f32[1,32], index: 4, kind: input, shape index: {}]   ;;  %s1110_s5 = inlined_call_operand.hbm [shape: f32[32,32], index: 5, kind: output, shape index: {}]  }
   0x1   :  { %12 = vsyncpa [#allocation3 + $0x1], 0 }
   0x2   :  { %13 = vsyncpa [#allocation6], 0 }
   0x3   :  { %14 = vsyncpa [#allocation4], 0 }
   0x4   :  { %16 = vsyncpa [#allocation4 + $0x1], 0  ;;  %s892_s18 = smov 0   ;;  %s894_s19 = smov 0  }
   0x5   :  { %s896_s20 = smov 0   ;;  %s898_s21 = smov 0  }
   0x6 LB: > { %s913_s22 = sadd.s32 4294967295, %s852_s21   ;;  %s573_s23 = sadd.s32 4294967294, %s852_s21   ;;  %s852_s21 = sphi %s898_s21, %s1133_s21   ;;  %s848_s20 = sphi %s896_s20, %s1132_s20   ;;  %s844_s19 = sphi %s894_s19, %s1131_s19   ;;  %s840_s18 = sphi %s892_s18, %s1130_s18  }
   0x7   : > { %p42_p0 = scmp.ne.s32.totalorder %s844_s19, %s840_s18  ;;  %p1111_p1 = scmp.eq.s32.totalorder %s913_s22, 0 }
   0x8   : > { %p150_p2 = scmp.eq.s32.totalorder %s913_s22, 1  ;;  %p156_p3 = scmp.eq.s32.totalorder %s573_s23, 1 }
   0x9   : > { %p922_p4 = por %p1111_p1, %p42_p0  ;;  %p574_p5 = scmp.ge.s32.totalorder %s852_s21, 1 }
   0xa   : > { %p927_p6 = por %p156_p3, %p42_p0  ;;  %p163_p7 = scmp.lt.s32.totalorder %s852_s21, 3 }
   0xb   : > { %s1116_s24 = scalar_select %p922_p4, 1, 0 }
   0xc   : > { %s1117_s25 = scalar_select %p927_p6, 1, 0 }
   0xd   : > { %p932_p8 = pnand %p574_p5, %p163_p7  ;;  %s854_s27 = smov [#allocation5]  }
   0xe   : > { %s175_s28 = sshll.u32 %s854_s27, 4  ;;  %s855_s30 = smov [#allocation7]   ;;  %s176_s28 = int_to_ptr.vmem [resolvable:$true] %s175_s28 }
   0xf   : > { %s1118_s26 = scalar_select %p932_p8, 1, 0 }
  0x10   : > { %p645_p9 = pneg %p932_p8  ;;  %s191_s6 = sshll.u32 %s855_s30, 4  ;;  %s192_s6 = int_to_ptr.vmem [resolvable:$true] %s191_s6 }
  0x11   : > { %s715_s7 = scalar_lea.vmem %s176_s28, 512  ;;  %p723_p5 = scmp.lt.s32.totalorder %s176_s28, %s176_s28 }
  0x12   : > { %p941_p11 = pnand %p645_p9, %p1111_p1  ;;  %p716_p13 = scmp.ne.s32.totalorder %s176_s28, %s715_s7 }
  0x13   : > { %p724_p7 = scmp.lt.s32.totalorder %s715_s7, %s715_s7 }
  0x14   : > { %p706_p12 = pneg %p941_p11 }
  0x15   : > { %p725_p10 = por %p724_p7, %p723_p5 }
  0x16   : > { %p718_p0 = pnand %p716_p13, %p706_p12 }
  0x18   : > { %p719_p3 = pneg %p718_p0 }
  0x1a   : > { %p726_p9 = pnand %p725_p10, %p719_p3 }
  0x1c   : > { %729 = shalt.err (!%p726_p9)
}
  0x1d   : > { %s1112_s8 = smov 128   ;;  %s857_s9 = smov 8  }
  0x1e   : > { %648 = dma.hbm_to_vmem [thread:$0]  (!%p941_p11), %s1106_s1, 512, %s176_s28, [#allocation6], %s1112_s8, %s1112_s8, %s857_s9  }
  0x1f   : > { %s741_s12 = scalar_lea.vmem %s192_s6, 512  ;;  %p749_p10 = scmp.lt.s32.totalorder %s192_s6, %s192_s6 }
  0x20   : > { %p742_p13 = scmp.ne.s32.totalorder %s192_s6, %s741_s12  ;;  %p750_p3 = scmp.lt.s32.totalorder %s741_s12, %s741_s12 }
  0x22   : > { %p744_p0 = pnand %p742_p13, %p706_p12  ;;  %p751_p7 = por %p750_p3, %p749_p10 }
  0x24   : > { %p745_p5 = pneg %p744_p0 }
  0x26   : > { %p752_p9 = pnand %p751_p7, %p745_p5 }
  0x28   : > { %755 = shalt.err (!%p752_p9)
}
  0x29   : > { %651 = dma.hbm_to_vmem [thread:$0]  (!%p941_p11), %s1108_s3, 512, %s192_s6, [#allocation6], %s1112_s8, %s1112_s8, %s857_s9  }
  0x2a   : > { %s970_s15 = sadd.s32 1, %s852_s21   ;;  %s29_s16 = sadd.s32 1, %s848_s20 }
  0x2b   : > { %s26_s17 = ssub.s32 %s852_s21, %s970_s15  ;;  %p36_p12 = scmp.ne.s32.totalorder %s848_s20, %s844_s19 }
  0x2c   : > { %p27_p13 = scmp.eq.s32.totalorder %s26_s17, 0  ;;  %p37_p0 = scmp.eq.s32.totalorder %s852_s21, 0 }
  0x2d   : > { %p980_p5 = por %p150_p2, %p36_p12  ;;  %p662_p10 = scmp.lt.s32.totalorder %s852_s21, 2 }
  0x2e   : > { %s986_s27 = scalar_select %p27_p13, %s848_s20, %s29_s16  }
  0x2f   : > { %s1120_s23 = scalar_select %p980_p5, 1, 0 }
  0x30   : > { %p38_p3 = por %p37_p0, %p36_p12  ;;  %s208_s28 = sand.u32 1, %s848_s20  }
  0x31   : > { %s578_s29 = sshll.u32 %s208_s28, 4  ;;  %s597_s30 = sshll.u32 %s852_s21, 8 }
  0x32   : > { %s993_s10 = scalar_lea.hbm %s1105_s0, %s597_s30  ;;  %s212_s11 = scalar_lea.vmem [#allocation2], %s578_s29 }
  0x33   : > { %s219_s12 = sshll.u32 %s212_s11, 4  ;;  %p997_p2 = pnand %p662_p10, %p38_p3  ;;  %s995_s12 = int_to_ptr.vmem [resolvable:$true] %s219_s12 }
  0x34   : > { %s1001_s14 = scalar_lea.sflag [#allocation3], %s208_s28  ;;  %s756_s16 = scalar_lea.hbm %s993_s10, 256 }
  0x35   : > { %p757_p11 = scmp.ne.s32.totalorder %s993_s10, %s756_s16  ;;  %p758_p7 = pneg %p997_p2 }
  0x36   : > { %s761_s29 = scalar_lea.hbm %s1105_s0, 512  ;;  %p762_p13 = scmp.lt.s32.totalorder %s993_s10, %s1105_s0 }
  0x37   : > { %p759_p9 = pnand %p758_p7, %p757_p11  ;;  %p763_p0 = scmp.lt.s32.totalorder %s761_s29, %s756_s16 }
  0x39   : > { %p760_p12 = pneg %p759_p9  ;;  %p764_p10 = por %p763_p0, %p762_p13 }
  0x3b   : > { %p765_p3 = pnand %p764_p10, %p760_p12 }
  0x3d   : > { %768 = shalt.err (!%p765_p3)
}
  0x3e   : > { %s769_s28 = scalar_lea.vmem %s995_s12, 256  ;;  %s858_s11 = smov [#allocation2]  }
  0x3f   : > { %p770_p1 = scmp.ne.s32.totalorder %s995_s12, %s769_s28  ;;  %s774_s8 = sshll.u32 %s858_s11, 4  ;;  %s775_s8 = int_to_ptr.vmem [resolvable:$false] %s774_s8 }
  0x40   : > { %s776_s17 = scalar_lea.vmem %s775_s8, 512  ;;  %p777_p9 = scmp.lt.s32.totalorder %s995_s12, %s775_s8 }
  0x41   : > { %p772_p6 = pnand %p770_p1, %p758_p7  ;;  %p778_p5 = scmp.lt.s32.totalorder %s776_s17, %s769_s28 }
  0x43   : > { %p773_p11 = pneg %p772_p6  ;;  %p779_p4 = por %p778_p5, %p777_p9 }
  0x45   : > { %p780_p8 = pnand %p779_p4, %p773_p11 }
  0x47   : > { %783 = shalt.err (!%p780_p8)
}
  0x48   : > { %s1122_s16 = smov 128   ;;  %p1123_p1 = scmp.ne.s32.totalorder %s1118_s26, 0 }
  0x49   : > { %655 = dma.hbm_to_vmem [thread:$0]  (!%p997_p2), %s993_s10, 256, %s995_s12, %s1001_s14, %s1122_s16, %s1122_s16, %s857_s9  }
  0x4a   : > { %231 = sbr.rel (%p1123_p1) target bundleno = 505 (0x1f9), region = 40  ;;  %s1028_s30 = sand.u32 (!%p1123_p1), 1, %s844_s19  }
  0x4b   : > { %s582_s8 = sshll.u32 (!%p1123_p1), %s1028_s30, 4  ;;  %s234_s29 = scalar_lea.sflag (!%p1123_p1), [#allocation3], %s1028_s30 }
  0x4c   : > { %s237_s13 = scalar_lea.vmem (!%p1123_p1), [#allocation2], %s582_s8  ;;  %p1124_p4 = scmp.ne.s32.totalorder (!%p1123_p1), %s1116_s24, 0 }
  0x4f   : > { %827 = dma.done.wait (%p1124_p4), %s234_s29, 256  }
  0x50   : > { %829 = vsyncadd (%p1124_p4), %s234_s29, 4294967040  ;;  %p1125_p6 = scmp.eq.s32.totalorder %s913_s22, 0 }
  0x52   : > { %831 = dma.done.wait (%p1125_p6), [#allocation6], 1024   ;;  %p1126_p8 = pmov %p1125_p6 }
  0x53   : > { %vm287_vm0 = vcmask 261120   ;;  %v279_v0 = vld [vmem:[#allocation5 + $0x18] sm:$0xff]  ;;  %v278_v1 = vld [vmem:[#allocation5 + $0x10] sm:$0xff]  ;;  %v277_v3 = vld [vmem:[#allocation5 + $0x8] sm:$0xff]  ;;  %s598_s12 = sshll.u32 %s913_s22, 8  ;;  %s271_s14 = scalar_lea.vmem [#allocation8], %s582_s8 }
  0x54   : > { %833 = vsyncadd (%p1126_p8), [#allocation6], 4294966272  ;;  %611 = vmatprep.subr.mxu0 %v279_v0  ;;  %v274_v2 = vld [vmem:[%s237_s13] sm:$0xff]  ;;  %v275_v5 = vld [vmem:[%s237_s13 + $0x8] sm:$0xff]  ;;  %s481_s6 = sshll.u32 %s271_s14, 4  ;;  %s1058_s11 = scalar_lea.hbm %s1110_s5, %s598_s12  ;;  %s1060_s6 = int_to_ptr.vmem [resolvable:$true] %s481_s6 }
  0x55   : > { %612 = vmatpush3.msra.mxu0 %v279_v0  ;;  %619 = vmatprep.mubr.msk.f32.mxu0 %vm287_vm0, %v274_v2  ;;  %v276_v4 = vld [vmem:[#allocation5] sm:$0xff]  ;;  %v374_v6 = vld [vmem:[#allocation7 + $0x18] sm:$0xff]  ;;  %v373_v7 = vld [vmem:[#allocation7 + $0x10] sm:$0xff]  ;;  %s468_s22 = scalar_lea.sflag [#allocation4], %s1028_s30  ;;  %s784_s17 = scalar_lea.vmem %s1060_s6, 256 }
  0x56   : > { %613 = vmatprep.subr.mxu0 %v278_v1  ;;  %622 = vmatprep.subr.mxu1 %v374_v6  ;;  %v372_v8 = vld [vmem:[#allocation7 + $0x8] sm:$0xff]  ;;  %v371_v9 = vld [vmem:[#allocation7] sm:$0xff]  ;;  %p785_p5 = scmp.ne.s32.totalorder %s1060_s6, %s784_s17  ;;  %p1127_p2 = scmp.ne.s32.totalorder %s1120_s23, 0 }
  0x57   : > { %614 = vmatpush3.msra.mxu0 %v278_v1  ;;  %623 = vmatpush3.msra.mxu1 %v374_v6  ;;  %v586_v10 = vld [vmem:[%s1107_s2] ss:$0 sm:$0xff]  ;;  %s859_s16 = smov [#allocation8]  }
  0x58   : > { %615 = vmatprep.subr.mxu0 %v277_v3  ;;  %624 = vmatprep.subr.mxu1 %v373_v7  ;;  %v589_v17 = vld [vmem:[%s1109_s4] ss:$0 sm:$0xff]  ;;  %p786_p7 = pnand %p785_p5, %p1127_p2  ;;  %s788_s8 = sshll.u32 %s859_s16, 4  ;;  %s789_s8 = int_to_ptr.vmem [resolvable:$false] %s788_s8 }
  0x59   : > { %616 = vmatpush3.msra.mxu0 %v277_v3  ;;  %625 = vmatpush3.msra.mxu1 %v373_v7  ;;  %s790_s29 = scalar_lea.vmem %s789_s8, 512  ;;  %p791_p13 = scmp.lt.s32.totalorder %s1060_s6, %s789_s8 }
  0x5a   : > { %617 = vmatprep.subr.mxu0 %v276_v4  ;;  %626 = vmatprep.subr.mxu1 %v372_v8  ;;  %p787_p12 = pneg %p786_p7  ;;  %p792_p0 = scmp.lt.s32.totalorder %s790_s29, %s784_s17 }
  0x5b   : > { %618 = vmatpush3.msra.mxu0 %v276_v4  ;;  %627 = vmatpush3.msra.mxu1 %v372_v8 }
  0x5c   : > { %620 = vmatmul.mubr.msk.f32.vlgmr.msra.gmra.mxu0 %vm287_vm0, %v275_v5  ;;  %628 = vmatprep.subr.mxu1 %v371_v9  ;;  %p793_p10 = por %p792_p0, %p791_p13 }
  0x5d   : > { %629 = vmatpush3.msra.mxu1 %v371_v9 }
  0x5e   : > { %p794_p3 = pnand %p793_p10, %p787_p12 }
 0x11c   : > { %v621_v11 = vpop.f32.mrf.mxu0 }
 0x11d   : > { %v366_v12 = vadd.f32 %v621_v11, %v586_v10 }
 0x11e   : > { %v360_v13 = vpop.f32.mrf.mxu0 }
 0x11f   : > { %v361_v14 = vadd.f32 %v586_v10, %v360_v13  ;;  %v370_v16 = vmax.f32 %v366_v12, 0.0 }
 0x121   : > { %v369_v15 = vmax.f32 %v361_v14, 0.0 }
 0x123   : > { %630 = vmatprep.mubr.msk.f32.mxu1 %vm287_vm0, %v369_v15 }
 0x124   : > { %631 = vmatmul.mubr.msk.f32.vlgmr.msra.gmra.mxu1 %vm287_vm0, %v370_v16 }
 0x1e4   : > { %v632_v18 = vpop.f32.mrf.mxu1 }
 0x1e5   : > { %v460_v19 = vadd.f32 %v632_v18, %v589_v17 }
 0x1e6   : > { %v454_v20 = vpop.f32.mrf.mxu1 }
 0x1e7   : > { %v464_v21 = vadd.f32 %v460_v19, %v275_v5  ;;  %v455_v22 = vadd.f32 %v589_v17, %v454_v20 }
 0x1e9   : > { %466 = vst.msk [vmem:[%s271_s14 + $0x8] sm:$0xff] %vm287_vm0, %v464_v21  ;;  %v463_v23 = vadd.f32 %v455_v22, %v274_v2 }
 0x1eb   : > { %465 = vst.msk [vmem:[%s271_s14] sm:$0xff] %vm287_vm0, %v463_v23 }
 0x1ec   : > { %797 = shalt.err (!%p794_p3)
}
 0x1ed   : > { %s798_s13 = scalar_lea.hbm %s1058_s11, 256  ;;  %s802_s9 = scalar_lea.hbm %s1110_s5, 512 }
 0x1ee   : > { %p799_p11 = scmp.ne.s32.totalorder %s1058_s11, %s798_s13  ;;  %p803_p4 = scmp.lt.s32.totalorder %s1058_s11, %s1110_s5 }
 0x1ef   : > { %p804_p6 = scmp.lt.s32.totalorder %s802_s9, %s798_s13 }
 0x1f0   : > { %p800_p9 = pnand %p799_p11, %p1127_p2 }
 0x1f1   : > { %p805_p8 = por %p804_p6, %p803_p4 }
 0x1f2   : > { %p801_p1 = pneg %p800_p9 }
 0x1f4   : > { %p806_p5 = pnand %p805_p8, %p801_p1 }
 0x1f6   : > { %809 = shalt.err (!%p806_p5)
}
 0x1f7   : > { %s860_s14 = smov 128   ;;  %s861_s7 = smov 8  }
 0x1f8   : > { %643 = dma.vmem_to_hbm [thread:$0]  (%p1127_p2), %s1060_s6, 256, %s1058_s11, %s468_s22, %s860_s14, %s860_s14, %s861_s7  }
 0x1f9 PF: > { %s496_s28 = sand.u32 1, %s840_s18   ;;  %p1128_p7 = scmp.ne.s32.totalorder %s1117_s25, 0 }
 0x1fa   : > { %p1129_p12 = scmp.ge.s32.totalorder %s852_s21, 2  ;;  %s497_s17 = scalar_lea.sflag [#allocation4], %s496_s28 }
 0x1fc   : > { %p657_p13 = pnand %p1129_p12, %p1128_p7 }
 0x1fe   : > { %p658_p0 = pneg %p657_p13 }
 0x200   : > { %835 = dma.done.wait (%p658_p0), %s497_s17, 256  }
 0x201   : > { %837 = vsyncadd (%p658_p0), %s497_s17, 4294967040  ;;  %p19_p10 = scmp.ge.s32.totalorder %s970_s15, 4   ;;  %s1130_s18 = smov %s844_s19 }
 0x202   : > { %s1131_s19 = smov %s848_s20  ;;  %s1132_s20 = smov %s986_s27 }
 0x203   : > { %s1133_s21 = smov %s970_s15  ;;  %21 = sbr.rel (!%p19_p10) target bundleno = 6 (0x6), region = 93 }
 0x208   :  { %502 = vsyncpa [#allocation3], 1 }
 0x209   :  { %504 = vsyncpa [#allocation3 + $0x1], 1 }
 0x20a   :  { %505 = vsyncpa [#allocation6], 1 }
 0x20b   :  { %506 = vsyncpa [#allocation4], 1 }
 0x20c   :  { %508 = vsyncpa [#allocation4 + $0x1], 1 }

</bundles_post_ra>
